<compile_context>
chip_gen: v7x
topology: tpu7x:2x2x1
jax: 0.10.0
libtpu: 0.0.40
codegen_flags: <defaults>
</compile_context>

<pallas_src>
import functools

import jax
import jax.numpy as jnp
from jax.experimental import pallas as pl
from jax.experimental.pallas import tpu as pltpu

BN_EPS = 1e-5
VMEM_LIMIT = 32 * 1024 * 1024


# ----------------------------------------------------------------------------
# in-kernel helpers
# ----------------------------------------------------------------------------
def _shift_cols(a, delta):
    """s[:, j] = a[:, j + delta], zero-filled where j + delta is out of range."""
    c, m = a.shape
    if delta == 0:
        return a
    if abs(delta) >= m:
        return jnp.zeros_like(a)
    pad = jnp.zeros((c, abs(delta)), dtype=a.dtype)
    if delta > 0:
        return jnp.concatenate([a[:, delta:], pad], axis=1)
    return jnp.concatenate([pad, a[:, :m + delta]], axis=1)


def _bn_scale_shift(sum_ref, sq_ref, gamma_ref, beta_ref, inv_count, eps):
    mean = sum_ref[...] * inv_count
    var = jnp.maximum(sq_ref[...] * inv_count - mean * mean, 0.0)
    scale = gamma_ref[...] * jax.lax.rsqrt(var + eps)
    shift = beta_ref[...] - mean * scale
    return scale, shift


def _conv3x3(a, w_ref, mneg, mpos, W2):
    """3x3 / stride 1 / pad 1 conv on an (C_in, H2*W2) slab.

    w_ref: (9, C_out, C_in) tap matrices.  Lane shifts give the source pixel
    (h+di, w+dj); zero-fill handles vertical overflow, mneg/mpos mask the
    horizontal boundary (w+dj outside [0, W2)).
    """
    c_out = w_ref.shape[1]
    m = a.shape[1]
    acc = jnp.zeros((c_out, m), jnp.float32)
    t = 0
    for di in (-1, 0, 1):
        for dj in (-1, 0, 1):
            s = _shift_cols(a, di * W2 + dj)
            if dj == -1:
                s = s * mneg
            elif dj == 1:
                s = s * mpos
            acc = acc + jnp.dot(w_ref[t], s, preferred_element_type=jnp.float32)
            t += 1
    return acc


# ----------------------------------------------------------------------------
# Pallas kernels
# ----------------------------------------------------------------------------
def _bn_stats_kernel(x_ref, psum_ref, psq_ref):
    # Per-image, per-channel sum / sum-of-squares (lane-dense reads of x).
    a = x_ref[0].astype(jnp.float32)                   # (C, H*W)
    psum_ref[0] = jnp.sum(a, axis=1, keepdims=True)    # (C, 1)
    psq_ref[0] = jnp.sum(a * a, axis=1, keepdims=True)


def _conv1_kernel(xu_ref, mneg_ref, mpos_ref, sum1_ref, sq1_ref, g1_ref, be1_ref,
                  w1_ref, b1_ref, h1_ref, ps2_ref, pq2_ref,
                  *, W2, inv_count1, eps, compute_dtype):
    # BN1-apply + ReLU + 3x3 conv1 + bias, with fused BN2 statistics.
    scale, shift = _bn_scale_shift(sum1_ref, sq1_ref, g1_ref, be1_ref, inv_count1, eps)
    x = xu_ref[0].astype(jnp.float32)                          # (ic, Mi)
    a = jnp.maximum(x * scale + shift, 0.0).astype(compute_dtype)
    acc = _conv3x3(a, w1_ref, mneg_ref[...], mpos_ref[...], W2) + b1_ref[...]
    h1_ref[0] = acc                                            # f32 intermediate
    ps2_ref[0] = jnp.sum(acc, axis=1, keepdims=True)           # fused BN2 stats (f32)
    pq2_ref[0] = jnp.sum(acc * acc, axis=1, keepdims=True)


def _conv2_kernel(h1_ref, xu_ref, mneg_ref, mpos_ref, sum2_ref, sq2_ref, g2_ref,
                  be2_ref, w2_ref, b2_ref, wsc_ref, bsc_ref, out_ref,
                  *, W2, inv_count2, eps, shortcut, compute_dtype):
    # BN2-apply + ReLU + 3x3 conv2 + bias + shortcut + residual add.
    scale, shift = _bn_scale_shift(sum2_ref, sq2_ref, g2_ref, be2_ref, inv_count2, eps)
    h = h1_ref[0].astype(jnp.float32)                          # (hc, Mi)
    a = jnp.maximum(h * scale + shift, 0.0).astype(compute_dtype)
    acc = _conv3x3(a, w2_ref, mneg_ref[...], mpos_ref[...], W2) + b2_ref[...]
    if shortcut == "conv":       # NN-up + 1x1 conv (commutes with the upsample)
        acc = acc + jnp.dot(wsc_ref[...], xu_ref[0].astype(compute_dtype),
                            preferred_element_type=jnp.float32) + bsc_ref[...]
    else:                        # identity residual (ic == oc, no upsample), f32
        acc = acc + xu_ref[0].astype(jnp.float32)
    out_ref[0] = acc             # f32, (oc, Mi): lane-dense NCHW-native store


# ----------------------------------------------------------------------------
# pallas_call wrappers
# ----------------------------------------------------------------------------
def _bn_stats(x_flat):
    n, c, hw = x_flat.shape
    return pl.pallas_call(
        _bn_stats_kernel,
        out_shape=(jax.ShapeDtypeStruct((n, c, 1), jnp.float32),
                   jax.ShapeDtypeStruct((n, c, 1), jnp.float32)),
        grid_spec=pltpu.PrefetchScalarGridSpec(
            num_scalar_prefetch=0,
            grid=(n,),
            in_specs=[pl.BlockSpec((1, c, hw), lambda i: (i, 0, 0))],
            out_specs=[pl.BlockSpec((1, c, 1), lambda i: (i, 0, 0)),
                       pl.BlockSpec((1, c, 1), lambda i: (i, 0, 0))]),
        compiler_params=pltpu.CompilerParams(
            dimension_semantics=("parallel",), vmem_limit_bytes=VMEM_LIMIT),
    )(x_flat)


def _conv1(xu, mneg, mpos, sum1, sq1, g1, be1, w1_taps, b1,
           *, W2, count1, compute_dtype):
    n, ic, mi = xu.shape
    hc = w1_taps.shape[1]
    kern = functools.partial(_conv1_kernel, W2=W2, inv_count1=1.0 / count1,
                             eps=BN_EPS, compute_dtype=compute_dtype)
    return pl.pallas_call(
        kern,
        out_shape=(jax.ShapeDtypeStruct((n, hc, mi), jnp.float32),
                   jax.ShapeDtypeStruct((n, hc, 1), jnp.float32),
                   jax.ShapeDtypeStruct((n, hc, 1), jnp.float32)),
        grid_spec=pltpu.PrefetchScalarGridSpec(
            num_scalar_prefetch=0,
            grid=(n,),
            in_specs=[
                pl.BlockSpec((1, ic, mi), lambda i: (i, 0, 0)),
                pl.BlockSpec((1, mi), lambda i: (0, 0)),
                pl.BlockSpec((1, mi), lambda i: (0, 0)),
                pl.BlockSpec((ic, 1), lambda i: (0, 0)),
                pl.BlockSpec((ic, 1), lambda i: (0, 0)),
                pl.BlockSpec((ic, 1), lambda i: (0, 0)),
                pl.BlockSpec((ic, 1), lambda i: (0, 0)),
                pl.BlockSpec((9, hc, ic), lambda i: (0, 0, 0)),
                pl.BlockSpec((hc, 1), lambda i: (0, 0)),
            ],
            out_specs=[
                pl.BlockSpec((1, hc, mi), lambda i: (i, 0, 0)),
                pl.BlockSpec((1, hc, 1), lambda i: (i, 0, 0)),
                pl.BlockSpec((1, hc, 1), lambda i: (i, 0, 0)),
            ]),
        compiler_params=pltpu.CompilerParams(
            dimension_semantics=("parallel",), vmem_limit_bytes=VMEM_LIMIT),
    )(xu, mneg, mpos, sum1, sq1, g1, be1, w1_taps, b1)


def _conv2(h1, xu, mneg, mpos, sum2, sq2, g2, be2, w2_taps, b2, wsc, bsc,
           *, W2, count2, shortcut, compute_dtype):
    n, hc, mi = h1.shape
    oc = w2_taps.shape[1]
    ic = xu.shape[1]
    kern = functools.partial(_conv2_kernel, W2=W2, inv_count2=1.0 / count2,
                             eps=BN_EPS, shortcut=shortcut,
                             compute_dtype=compute_dtype)
    return pl.pallas_call(
        kern,
        out_shape=jax.ShapeDtypeStruct((n, oc, mi), jnp.float32),
        grid_spec=pltpu.PrefetchScalarGridSpec(
            num_scalar_prefetch=0,
            grid=(n,),
            in_specs=[
                pl.BlockSpec((1, hc, mi), lambda i: (i, 0, 0)),
                pl.BlockSpec((1, ic, mi), lambda i: (i, 0, 0)),
                pl.BlockSpec((1, mi), lambda i: (0, 0)),
                pl.BlockSpec((1, mi), lambda i: (0, 0)),
                pl.BlockSpec((hc, 1), lambda i: (0, 0)),
                pl.BlockSpec((hc, 1), lambda i: (0, 0)),
                pl.BlockSpec((hc, 1), lambda i: (0, 0)),
                pl.BlockSpec((hc, 1), lambda i: (0, 0)),
                pl.BlockSpec((9, oc, hc), lambda i: (0, 0, 0)),
                pl.BlockSpec((oc, 1), lambda i: (0, 0)),
                pl.BlockSpec((oc, ic), lambda i: (0, 0)),
                pl.BlockSpec((oc, 1), lambda i: (0, 0)),
            ],
            out_specs=pl.BlockSpec((1, oc, mi), lambda i: (i, 0, 0))),
        compiler_params=pltpu.CompilerParams(
            dimension_semantics=("parallel",), vmem_limit_bytes=VMEM_LIMIT),
    )(h1, xu, mneg, mpos, sum2, sq2, g2, be2, w2_taps, b2, wsc, bsc)


# ----------------------------------------------------------------------------
# Module
# ----------------------------------------------------------------------------
class GenBlk:
    """JAX/Pallas port of the torch GenBlk (training-mode BatchNorm forward)."""

    def __init__(self, key, ic, hc, oc, upsample, compute_dtype=jnp.bfloat16):
        if ic != oc and not upsample:
            # torch's GenBlk hits a shape mismatch in forward() for this config
            raise ValueError("ic != oc requires upsample=True (as in the torch module)")
        self.ic, self.hc, self.oc, self.upsample = ic, hc, oc, upsample
        self.cdt = compute_dtype

        k1, k2, k3 = jax.random.split(key, 3)

        def conv_params(k, cout, cin, ks):
            kw, kb = jax.random.split(k)
            bound = float(cin * ks * ks) ** -0.5       # torch Conv2d default bounds
            w = jax.random.uniform(kw, (cout, cin, ks, ks), jnp.float32, -bound, bound)
            b = jax.random.uniform(kb, (cout,), jnp.float32, -bound, bound)
            return w, b

        w1, b1 = conv_params(k1, hc, ic, 3)
        w2, b2 = conv_params(k2, oc, hc, 3)
        # (kh, kw, cout, cin) -> (9, cout, cin) tap matrices for shifted matmuls
        self.w1_taps = jnp.transpose(w1, (2, 3, 0, 1)).reshape(9, hc, ic).astype(self.cdt)
        self.w2_taps = jnp.transpose(w2, (2, 3, 0, 1)).reshape(9, oc, hc).astype(self.cdt)
        self.b1 = b1.reshape(hc, 1)
        self.b2 = b2.reshape(oc, 1)

        # BatchNorm affine params (torch defaults: weight=1, bias=0)
        self.g1 = jnp.ones((ic, 1), jnp.float32)
        self.be1 = jnp.zeros((ic, 1), jnp.float32)
        self.g2 = jnp.ones((hc, 1), jnp.float32)
        self.be2 = jnp.zeros((hc, 1), jnp.float32)

        if ic != oc or upsample:
            wsc, bsc = conv_params(k3, oc, ic, 1)
            self.wsc = wsc.reshape(oc, ic).astype(self.cdt)
            self.bsc = bsc.reshape(oc, 1)
            self.shortcut = "conv"
        else:
            self.wsc = jnp.zeros((oc, ic), self.cdt)
            self.bsc = jnp.zeros((oc, 1), jnp.float32)
            self.shortcut = "identity"

    def __call__(self, x):
        x = x.astype(jnp.float32)
        n, c, h, w = x.shape
        assert c == self.ic

        # kernel 1: BN1 batch statistics of the raw input (per-image partials)
        psum, psq = _bn_stats(x.reshape(n, c, h * w))
        sum1, sq1 = jnp.sum(psum, axis=0), jnp.sum(psq, axis=0)          # (ic, 1)

        # nearest-neighbour upsample (layout-only; BN/ReLU commute with it)
        if self.upsample:
            xu = jnp.repeat(jnp.repeat(x, 2, axis=2), 2, axis=3)
            h2, w2 = 2 * h, 2 * w
        else:
            xu, h2, w2 = x, h, w
        mi = h2 * w2
        xu_flat = xu.reshape(n, c, mi)                                    # f32, lane-dense

        # horizontal-boundary masks shared by both 3x3 convs
        wcol = jnp.arange(mi, dtype=jnp.int32) % w2
        mneg = (wcol >= 1).astype(self.cdt).reshape(1, mi)
        mpos = (wcol <= w2 - 2).astype(self.cdt).reshape(1, mi)

        # kernel 2: BN1-apply + ReLU + conv1 + bias, fused BN2 statistics
        h1, ps2, pq2 = _conv1(xu_flat, mneg, mpos, sum1, sq1, self.g1, self.be1,
                              self.w1_taps, self.b1, W2=w2, count1=n * h * w,
                              compute_dtype=self.cdt)
        sum2, sq2 = jnp.sum(ps2, axis=0), jnp.sum(pq2, axis=0)           # (hc, 1)

        # kernel 3: BN2-apply + ReLU + conv2 + bias + shortcut + residual add
        out = _conv2(h1, xu_flat, mneg, mpos, sum2, sq2, self.g2, self.be2,
                     self.w2_taps, self.b2, self.wsc, self.bsc,
                     W2=w2, count2=n * mi, shortcut=self.shortcut,
                     compute_dtype=self.cdt)
        return out.reshape(n, self.oc, h2, w2)     # already NCHW: no final transpose


# ----------------------------------------------------------------------------
if __name__ == "__main__":
    key = jax.random.PRNGKey(0)
    kx, kp, kp2 = jax.random.split(key, 3)

    # upsampling path: ic != oc, shortcut = NN-up + 1x1 conv
    x = jax.random.normal(kx, (2, 4, 16, 16), dtype=jnp.float32)
    blk = GenBlk(kp, ic=4, hc=8, oc=16, upsample=True)
    y = blk(x)
    jax.block_until_ready(y)
    assert y.shape == (2, 16, 32, 32), y.shape
    assert bool(jnp.all(jnp.isfinite(y)))

    # identity-shortcut path: ic == oc, no upsample
    x2 = jax.random.normal(kx, (2, 8, 16, 16), dtype=jnp.float32)
    blk2 = GenBlk(kp2, ic=8, hc=8, oc=8, upsample=False)
    y2 = blk2(x2)
    jax.block_until_ready(y2)
    assert y2.shape == (2, 8, 16, 16), y2.shape
    assert bool(jnp.all(jnp.isfinite(y2)))

    print("KERNEL_OK")
</pallas_src>

<mosaic_0001>
module attributes {stable_mosaic.version = 11 : i64} {
  func.func @_bn_stats_kernel(%arg0: i32, %arg1: memref<1x4x256xf32, #tpu.memory_space<vmem>>, %arg2: memref<1x4x1xf32, #tpu.memory_space<vmem>>, %arg3: memref<1x4x1xf32, #tpu.memory_space<vmem>>) attributes {dimension_semantics = [#tpu.dimension_semantics<parallel>], iteration_bounds = array<i64: 2>, scalar_prefetch = 0 : i64, scratch_operands = 0 : i64, tpu.core_type = #tpu.core_type<tc>, window_params = [{transform_indices = @transform_0, window_bounds = array<i64: 1, 4, 256>}, {transform_indices = @transform_1, window_bounds = array<i64: 1, 4, 1>}, {transform_indices = @transform_2, window_bounds = array<i64: 1, 4, 1>}]} {
    %c0 = arith.constant 0 : index
    %c0_0 = arith.constant 0 : index
    %c0_1 = arith.constant 0 : index
    %0 = vector.load %arg1[%c0, %c0_0, %c0_1] : memref<1x4x256xf32, #tpu.memory_space<vmem>>, vector<1x4x256xf32>
    %1 = vector.shape_cast %0 : vector<1x4x256xf32> to vector<4x256xf32>
    %cst = arith.constant dense<0.000000e+00> : vector<4xf32>
    %2 = vector.multi_reduction <add>, %1, %cst [1] : vector<4x256xf32> to vector<4xf32>
    %3 = vector.shape_cast %2 : vector<4xf32> to vector<4x1xf32>
    %c0_2 = arith.constant 0 : index
    %c0_3 = arith.constant 0 : index
    %c0_4 = arith.constant 0 : index
    %4 = vector.load %arg2[%c0_2, %c0_3, %c0_4] : memref<1x4x1xf32, #tpu.memory_space<vmem>>, vector<1x4x1xf32>
    %5 = vector.shape_cast %4 : vector<1x4x1xf32> to vector<4x1xf32>
    %6 = vector.shape_cast %3 : vector<4x1xf32> to vector<1x4x1xf32>
    tpu.vector_store %arg2[%c0_2, %c0_3, %c0_4], %6 {strides = array<i32>} : memref<1x4x1xf32, #tpu.memory_space<vmem>>, vector<1x4x1xf32>,
    %7 = arith.mulf %1, %1 : vector<4x256xf32>
    %cst_5 = arith.constant dense<0.000000e+00> : vector<4xf32>
    %8 = vector.multi_reduction <add>, %7, %cst_5 [1] : vector<4x256xf32> to vector<4xf32>
    %9 = vector.shape_cast %8 : vector<4xf32> to vector<4x1xf32>
    %c0_6 = arith.constant 0 : index
    %c0_7 = arith.constant 0 : index
    %c0_8 = arith.constant 0 : index
    %10 = vector.load %arg3[%c0_6, %c0_7, %c0_8] : memref<1x4x1xf32, #tpu.memory_space<vmem>>, vector<1x4x1xf32>
    %11 = vector.shape_cast %10 : vector<1x4x1xf32> to vector<4x1xf32>
    %12 = vector.shape_cast %9 : vector<4x1xf32> to vector<1x4x1xf32>
    tpu.vector_store %arg3[%c0_6, %c0_7, %c0_8], %12 {strides = array<i32>} : memref<1x4x1xf32, #tpu.memory_space<vmem>>, vector<1x4x1xf32>,
    return
  }
  func.func @transform_0(%arg0: i32) -> (i32, i32, i32) {
    %c0_i32 = arith.constant 0 : i32
    %c0_i32_0 = arith.constant 0 : i32
    %c0_i32_1 = arith.constant 0 : i32
    return %arg0, %c0_i32, %c0_i32_0 : i32, i32, i32
  }
  func.func @transform_1(%arg0: i32) -> (i32, i32, i32) {
    %c0_i32 = arith.constant 0 : i32
    %c0_i32_0 = arith.constant 0 : i32
    %c0_i32_1 = arith.constant 0 : i32
    return %arg0, %c0_i32, %c0_i32_0 : i32, i32, i32
  }
  func.func @transform_2(%arg0: i32) -> (i32, i32, i32) {
    %c0_i32 = arith.constant 0 : i32
    %c0_i32_0 = arith.constant 0 : i32
    %c0_i32_1 = arith.constant 0 : i32
    return %arg0, %c0_i32, %c0_i32_0 : i32, i32, i32
  }
}

</mosaic_0001>

<bundles_post_ra>
// kernel: tpu_custom_call.1
= control target key start
LH: loop header
LB: loop body
LE: loop exit
PB: predicated region body
PF: predicated region fallthrough
CT: control target
= control target key end

     0   :  { %8 = vsyncpa [#allocation3], 0  ;;  %s534_s0 = inlined_call_operand.hbm [shape: f32[2,4,256], index: 0, kind: input, shape index: {}]   ;;  %s535_s1 = inlined_call_operand.vmem [shape: f32[2,4,1], index: 1, kind: output, shape index: {0}]   ;;  %s536_s2 = inlined_call_operand.vmem [shape: f32[2,4,1], index: 2, kind: output, shape index: {1}]  }
   0x1   :  { %10 = vsyncpa [#allocation3 + $0x1], 0  ;;  %s424_s9 = smov 0   ;;  %s426_s10 = smov 0  }
   0x2   :  { %s428_s11 = smov 0   ;;  %s430_s12 = smov 0  }
   0x3 LB: > { %s443_s13 = sadd.s32 4294967295, %s406_s12   ;;  %s446_s14 = sadd.s32 1, %s406_s12   ;;  %s406_s12 = sphi %s430_s12, %s544_s12   ;;  %s402_s11 = sphi %s428_s11, %s543_s11   ;;  %s398_s10 = sphi %s426_s10, %s542_s10   ;;  %s394_s9 = sphi %s424_s9, %s541_s9  }
   0x4   : > { %s20_s15 = ssub.s32 %s406_s12, %s446_s14  ;;  %s23_s16 = sadd.s32 1, %s402_s11 }
   0x5   : > { %p21_p0 = scmp.eq.s32.totalorder %s20_s15, 0  ;;  %p30_p1 = scmp.ne.s32.totalorder %s402_s11, %s398_s10 }
   0x6   : > { %p31_p2 = scmp.eq.s32.totalorder %s406_s12, 0  ;;  %p36_p3 = scmp.ne.s32.totalorder %s398_s10, %s394_s9 }
   0x7   : > { %s456_s17 = scalar_select %p21_p0, %s402_s11, %s23_s16  }
   0x8   : > { %p32_p4 = por %p31_p2, %p30_p1  ;;  %p37_p5 = scmp.eq.s32.totalorder %s443_s13, 0 }
   0x9   : > { %p308_p6 = scmp.lt.s32.totalorder %s406_s12, 2  ;;  %s112_s19 = sand.u32 1, %s402_s11  }
   0xa   : > { %p460_p7 = por %p37_p5, %p36_p3  ;;  %s292_s20 = sshll.u32 %s112_s19, 3 }
   0xb   : > { %s301_s21 = sshll.u32 %s406_s12, 7  ;;  %s116_s25 = scalar_lea.vmem [#allocation2], %s292_s20 }
   0xc   : > { %s469_s24 = scalar_lea.hbm %s534_s0, %s301_s21  ;;  %s124_s26 = sshll.u32 %s116_s25, 4  ;;  %s471_s26 = int_to_ptr.vmem [resolvable:$true] %s124_s26 }
   0xd   : > { %p473_p8 = pnand %p308_p6, %p32_p4  ;;  %s113_s28 = scalar_lea.sflag [#allocation3], %s112_s19 }
   0xe   : > { %s342_s29 = scalar_lea.hbm %s469_s24, 128  ;;  %s347_s4 = scalar_lea.hbm %s534_s0, 256 }
   0xf   : > { %p343_p11 = scmp.ne.s32.totalorder %s469_s24, %s342_s29  ;;  %p344_p12 = pneg %p473_p8 }
  0x10   : > { %p348_p1 = scmp.lt.u32.totalorder %s469_s24, %s534_s0  ;;  %p349_p2 = scmp.lt.u32.totalorder %s347_s4, %s342_s29 }
  0x11   : > { %p345_p13 = pnand %p344_p12, %p343_p11  ;;  %p351_p4 = scmp.lt.u32.totalorder %s342_s29, %s469_s24 }
  0x12   : > { %p350_p3 = por %p349_p2, %p348_p1 }
  0x13   : > { %p346_p0 = pneg %p345_p13 }
  0x14   : > { %p352_p5 = por %p351_p4, %p350_p3 }
  0x16   : > { %p353_p6 = pnand %p352_p5, %p346_p0 }
  0x18   : > { %356 = shalt.err (!%p353_p6)
}
  0x19   : > { %s357_s7 = scalar_lea.vmem %s471_s26, 128  ;;  %s408_s8 = smov [#allocation2]  }
  0x1a   : > { %p358_p11 = scmp.ne.s32.totalorder %s471_s26, %s357_s7  ;;  %s362_s9 = sshll.u32 %s408_s8, 4  ;;  %s363_s9 = int_to_ptr.vmem [resolvable:$false] %s362_s9 }
  0x1b   : > { %s364_s15 = scalar_lea.vmem %s363_s9, 256  ;;  %p365_p10 = scmp.lt.s32.totalorder %s471_s26, %s363_s9 }
  0x1c   : > { %p360_p13 = pnand %p358_p11, %p344_p12  ;;  %p366_p1 = scmp.lt.s32.totalorder %s364_s15, %s357_s7 }
  0x1e   : > { %p361_p9 = pneg %p360_p13  ;;  %p367_p2 = por %p366_p1, %p365_p10 }
  0x20   : > { %p368_p3 = pnand %p367_p2, %p361_p9 }
  0x22   : > { %371 = shalt.err (!%p368_p3)
}
  0x23   : > { %307 = dma.hbm_to_vmem [thread:$0]  (!%p473_p8), %s469_s24, 128, %s471_s26, %s113_s28  }
  0x24   : > { %p539_p0 = scmp.lt.s32.totalorder %s406_s12, 3  ;;  %p540_p4 = scmp.ge.s32.totalorder %s406_s12, 1 }
  0x26   : > { %p130_p12 = pnand %p540_p4, %p539_p0 }
  0x27   : > { %s135_s16 = sand.u32 (!%p130_p12), 1, %s398_s10  }
  0x28   : > { %133 = sbr.rel (%p130_p12) target bundleno = 201 (0xc9), region = 24  ;;  %s296_s19 = sshll.u32 (!%p130_p12), %s135_s16, 3 }
  0x29   : > { %s136_s20 = scalar_lea.sflag (!%p130_p12), [#allocation3], %s135_s16  ;;  %s139_s21 = scalar_lea.vmem (!%p130_p12), [#allocation2], %s296_s19 }
  0x2f   : > { %389 = dma.done.wait (%p460_p7), %s136_s20, 128  }
  0x30   : > { %391 = vsyncadd (%p460_p7), %s136_s20, 4294967168  ;;  %vm175_vm0 = vcmask 1043456   ;;  %v171_v0 = vld [vmem:[%s139_s21] sm:$0xff]  ;;  %p163_p8 = scmp.lt.s32.totalorder %s443_s13, 1  ;;  %vm181_vm1 = vcmask 3072  }
  0x31   : > { %v173_v1 = vcombine.high %v171_v0, %v171_v0  ;;  %v176_v2 = vsel %vm175_vm0, %v171_v0, 0.0  ;;  %v183_v3 = vmul.f32 %v171_v0, %v171_v0 }
  0x32   : > { %s546_s13 = smov (!%p163_p8, %s443_s13), 1 }
  0x33   : > { %v177_v4 = vsel %vm175_vm0, %v173_v1, 0.0  ;;  %v185_v5 = vcombine.high %v183_v3, %v183_v3  ;;  %v187_v6 = vsel %vm175_vm0, %v183_v3, 0.0  ;;  %s297_s12 = sshll.u32 %s546_s13, 2 }
  0x34   : > { %v178_v7 = vadd.f32 %v177_v4, %v176_v2  ;;  %s166_s23 = scalar_lea.vmem %s535_s1, %s297_s12  ;;  %s170_s26 = scalar_lea.vmem %s536_s2, %s297_s12 }
  0x35   : > { %v188_v8 = vsel %vm175_vm0, %v185_v5, 0.0 }
  0x36   : > { %179 = vadd.xlane.f32.xlu0 %v178_v7  ;;  %v189_v9 = vadd.f32 %v188_v8, %v187_v6 }
  0x3a   : > { %190 = vadd.xlane.f32.xlu0 %v189_v9 }
  0xc3   : > { %v180_v10 = vpop.xlane.xlu0 %179 }
  0xc4   : > { %182 = vst.msk [vmem:[%s166_s23] sm:$0xf] %vm181_vm1, %v180_v10 }
  0xc7   : > { %v191_v11 = vpop.xlane.xlu0 %190 }
  0xc8   : > { %192 = vst.msk [vmem:[%s170_s26] sm:$0xf] %vm181_vm1, %v191_v11 }
  0xc9 PF: > { %p13_p7 = scmp.ge.s32.totalorder %s446_s14, 4   ;;  %s541_s9 = smov %s398_s10 }
  0xca   : > { %s542_s10 = smov %s402_s11  ;;  %s543_s11 = smov %s456_s17 }
  0xcb   : > { %s544_s12 = smov %s446_s14  ;;  %15 = sbr.rel (!%p13_p7) target bundleno = 3 (0x3), region = 76 }
  0xd2   :  { %226 = vsyncpa [#allocation3], 1 }
  0xd3   :  { %228 = vsyncpa [#allocation3 + $0x1], 1 }

</bundles_post_ra>
